<compile_context>
chip_gen: v7x
topology: tpu7x:2x2x1
jax: 0.10.0
libtpu: 0.0.40
codegen_flags: <defaults>
</compile_context>

<pallas_src>
import functools

import jax
import jax.numpy as jnp
from jax import lax
from jax.experimental import pallas as pl
from jax.experimental.pallas import tpu as pltpu


# ------------------------------------------------------------ chip sizing ---

@functools.lru_cache(maxsize=None)
def _vmem_params():
    """(buffered-bytes budget, vmem_limit_bytes) sized per chip generation."""
    cap = None
    try:
        cap = getattr(pltpu.get_tpu_info(), "vmem_capacity_bytes", None)
    except Exception:
        cap = None
    if cap is None:
        cap = 64 * 1024 * 1024                   # unknown -> assume v7x-sized
    if cap >= 96 * 1024 * 1024:                  # v5e / v6e: 128 MiB physical
        return 32 * 1024 * 1024, 80 * 1024 * 1024
    return 24 * 1024 * 1024, 48 * 1024 * 1024    # v7x: 64 MiB per TensorCore


def _sublane_align(dtype):
    # f32 -> 8, bf16 -> 16, int8/fp8 -> 32: keeps stores sublane-dense (unmasked vst).
    return max(8, 32 // jnp.dtype(dtype).itemsize)


def _pick_block(n, target, align=8, min_steps=1):
    """Tile size for a cdiv-tiled axis of extent n.

    Largest multiple of `align` that is <= min(n, target) (and, if
    min_steps > 1, <= ceil(n / min_steps)), clamped to >= align.  For
    n <= align returns the full extent (always a legal block dim).  Callers
    use grid = pl.cdiv(n, tile); ragged tails are masked by Pallas (plus
    explicit -inf masking inside reductions).
    """
    if n <= align:
        return n
    cap = min(n, max(int(target), align))
    if min_steps > 1:
        cap = min(cap, -(-n // min_steps))       # ceil(n / min_steps)
    t = cap - cap % align
    return max(t, align)


# ---------------------------------------------------------------- kernels ---

def _avg_kernel(l_ref, r_ref, o_ref):
    # Native-dtype arithmetic: bit-parity with torch's 0.5 * (l + r)
    # (the add rounds in the input dtype; *0.5 is exact).
    o_ref[...] = ((l_ref[...] + r_ref[...]) * 0.5).astype(o_ref.dtype)


def _cat_halves_kernel(l_ref, r_ref, o_ref, *, half):
    # l_ref already holds lanes [0, half), r_ref holds lanes [half, D)
    # (half-width input blocks).  Stores are lane-aligned (half % 128 == 0),
    # so this is effectively a DMA-only kernel with unmasked vst.
    o_ref[:, :half] = l_ref[...]
    o_ref[:, half:] = r_ref[...]


def _cat_slice_kernel(l_ref, r_ref, o_ref, *, half):
    # TODO(synk): fallback reads 2*D per row but keeps only D (1.33x excess
    # HBM read); dead code for 'base'/'large' (384/512 are lane-aligned).
    o_ref[:, :half] = l_ref[:, :half]
    o_ref[:, half:] = r_ref[:, half:]


def _max_kernel(l_ref, r_ref, v_ref, i_ref, vacc_ref, iacc_ref, *, seq_len, ts):
    """Online max + first-occurrence argmax over seq chunks.

    Grid = (batch_block, d_block, seq_chunk); seq is the innermost
    "arbitrary" axis so the (tb, td) accumulators re-initialize per
    (batch, d_block).  Max/compare run in the input dtype (exact).
    NOTE(NaN): jnp.max propagates NaN into the value, but `l == new_v` is
    False for NaN so the index falls back to a clamped sentinel rather than
    the NaN position that torch would return.
    """
    s = pl.program_id(2)
    big = jnp.int32(2 * seq_len)

    @pl.when(s == 0)
    def _():
        vacc_ref[...] = jnp.full(vacc_ref.shape, -jnp.inf, dtype=vacc_ref.dtype)
        iacc_ref[...] = jnp.full(iacc_ref.shape, 2 * seq_len, dtype=jnp.int32)

    off = s * ts
    l = l_ref[...]                                        # (TB, TS, TD)
    r = r_ref[...]
    iota = lax.broadcasted_iota(jnp.int32, l.shape, 1)    # local seq index

    if seq_len % ts != 0:
        # cdiv ragged tail: mask padded seq rows so they never win.
        valid = (iota + off) < seq_len
        neg_inf = jnp.array(-jnp.inf, dtype=l.dtype)
        l = jnp.where(valid, l, neg_inf)
        r = jnp.where(valid, r, neg_inf)

    chunk_max = jnp.maximum(jnp.max(l, axis=1), jnp.max(r, axis=1))   # (TB, TD)
    new_v = jnp.maximum(vacc_ref[...], chunk_max)

    # Min-reduce the raw local iota, then add offsets on the reduced (TB, TD)
    # result (saves two full-tile integer adds per step).
    big_rel = jnp.int32(ts)
    il_rel = jnp.min(jnp.where(l == new_v[:, None, :], iota, big_rel), axis=1)
    ir_rel = jnp.min(jnp.where(r == new_v[:, None, :], iota, big_rel), axis=1)
    il = jnp.where(il_rel < big_rel, il_rel + off, big)
    ir = jnp.where(ir_rel < big_rel, ir_rel + off + seq_len, big)
    prev_i = jnp.where(vacc_ref[...] == new_v, iacc_ref[...], big)

    vacc_ref[...] = new_v
    iacc_ref[...] = jnp.minimum(jnp.minimum(il, ir), prev_i)

    @pl.when(s == pl.num_programs(2) - 1)
    def _():
        v_ref[...] = vacc_ref[...].astype(v_ref.dtype)
        # Clamp the sentinel so a pathological (all-NaN) lane cannot emit an
        # out-of-range index.
        i_ref[...] = jnp.minimum(iacc_ref[...], jnp.int32(2 * seq_len - 1))


# --------------------------------------------------------------- wrappers ---

class Composer:
    """JAX/Pallas port of the parameter-free PyTorch Composer module."""

    def __init__(self, compose_fn, model_name):
        self.compose_fn = compose_fn
        if 'base' in model_name:
            self.half_dim = 384
        elif 'large' in model_name:
            self.half_dim = 512
        else:
            raise ValueError(
                "cannot infer half_dim from model name %r (need 'base' or 'large')"
                % model_name)
        assert self.compose_fn in ['avg', 'max', 'cat_first_last'], \
            'unrecognized pooling type %s' % self.compose_fn

    def __call__(self, r_left, r_right):
        if self.compose_fn == 'avg':
            return self._avg(r_left, r_right)
        elif self.compose_fn == 'max':
            return self._max(r_left, r_right)
        elif self.compose_fn == 'cat_first_last':
            return self._cat_first_last(r_left, r_right)
        else:
            raise NotImplementedError

    # ---- avg --------------------------------------------------------------
    def _avg(self, r_left, r_right):
        B, S, D = r_left.shape
        rows = B * S
        budget, limit = _vmem_params()
        nbytes = jnp.dtype(r_left.dtype).itemsize
        align = _sublane_align(r_left.dtype)
        # 3 double-buffered tiles (l, r, out) + elementwise temporaries ~ 8x.
        tr = _pick_block(rows, budget // (8 * D * nbytes),
                         align=align, min_steps=2)
        l2 = r_left.reshape(rows, D)
        r2 = r_right.reshape(rows, D)
        spec = pl.BlockSpec((tr, D), lambda i: (i, 0))
        out = pl.pallas_call(
            _avg_kernel,
            out_shape=jax.ShapeDtypeStruct((rows, D), r_left.dtype),
            grid=(pl.cdiv(rows, tr),),
            in_specs=[spec, spec],
            out_specs=pl.BlockSpec((tr, D), lambda i: (i, 0)),
            compiler_params=pltpu.CompilerParams(
                dimension_semantics=("parallel",),
                vmem_limit_bytes=limit),
        )(l2, r2)
        return out.reshape(B, S, D)

    # ---- cat_first_last ---------------------------------------------------
    def _cat_first_last(self, r_left, r_right):
        B, S, D = r_left.shape
        half = self.half_dim
        rows = B * S
        budget, limit = _vmem_params()
        nbytes = jnp.dtype(r_left.dtype).itemsize
        align = _sublane_align(r_left.dtype)
        l2 = r_left.reshape(rows, D)
        r2 = r_right.reshape(rows, D)

        if D == 2 * half and half % 128 == 0:
            # Only DMA the half of each input we keep: left reads lane block 0
            # ([0, half)), right reads lane block 1 ([half, D)).
            tr = _pick_block(rows, budget // (6 * D * nbytes),
                             align=align, min_steps=2)
            kernel = functools.partial(_cat_halves_kernel, half=half)
            in_specs = [pl.BlockSpec((tr, half), lambda i: (i, 0)),
                        pl.BlockSpec((tr, half), lambda i: (i, 1))]
        else:
            # Lane offsets not expressible as half-width blocks; full-width
            # loads with in-kernel slicing (no concat materialized).
            tr = _pick_block(rows, budget // (8 * D * nbytes),
                             align=align, min_steps=2)
            kernel = functools.partial(_cat_slice_kernel, half=half)
            full = pl.BlockSpec((tr, D), lambda i: (i, 0))
            in_specs = [full, full]

        out = pl.pallas_call(
            kernel,
            out_shape=jax.ShapeDtypeStruct((rows, D), r_left.dtype),
            grid=(pl.cdiv(rows, tr),),
            in_specs=in_specs,
            out_specs=pl.BlockSpec((tr, D), lambda i: (i, 0)),
            compiler_params=pltpu.CompilerParams(
                dimension_semantics=("parallel",),
                vmem_limit_bytes=limit),
        )(l2, r2)
        return out.reshape(B, S, D)

    # ---- max --------------------------------------------------------------
    def _max(self, r_left, r_right):
        B, S, D = r_left.shape
        budget, limit = _vmem_params()
        nbytes = jnp.dtype(r_left.dtype).itemsize
        align = _sublane_align(r_left.dtype)

        tb = _pick_block(B, 8)                    # batch rows per step
        b_steps = pl.cdiv(B, tb)
        # If the batch grid has a single step, split D into two lane-aligned
        # halves so a second parallel axis exists (keeps both v7x TensorCores
        # fed; harmless on single-TC chips).
        td = D // 2 if (b_steps < 2 and D % 256 == 0) else D
        d_steps = D // td

        # 2 double-buffered (tb, ts, td) inputs + full-tile temporaries ~ 12x.
        ts = _pick_block(S, budget // (12 * tb * td * nbytes), align=align)

        kernel = functools.partial(_max_kernel, seq_len=S, ts=ts)
        in_spec = pl.BlockSpec((tb, ts, td), lambda b, d, s: (b, s, d))
        out_spec = pl.BlockSpec((tb, td), lambda b, d, s: (b, d))
        vals, idx = pl.pallas_call(
            kernel,
            out_shape=(jax.ShapeDtypeStruct((B, D), r_left.dtype),
                       jax.ShapeDtypeStruct((B, D), jnp.int32)),
            grid=(b_steps, d_steps, pl.cdiv(S, ts)),
            in_specs=[in_spec, in_spec],
            out_specs=(out_spec, out_spec),
            scratch_shapes=[pltpu.VMEM((tb, td), r_left.dtype),
                            pltpu.VMEM((tb, td), jnp.int32)],
            compiler_params=pltpu.CompilerParams(
                dimension_semantics=("parallel", "parallel", "arbitrary"),
                vmem_limit_bytes=limit),
        )(r_left, r_right)
        return vals, idx


# ------------------------------------------------------------------- main ---

if __name__ == "__main__":
    key = jax.random.PRNGKey(0)
    half_dim = 384                 # 'base' model
    D = 2 * half_dim               # 768

    # (2, 8): tidy shapes; (3, 20): exercises cdiv ragged tails + seq masking.
    for (B, S) in [(2, 8), (3, 20)]:
        k1, k2 = jax.random.split(jax.random.fold_in(key, 1000 * B + S))
        r_left = jax.random.normal(k1, (B, S, D), dtype=jnp.float32)
        r_right = jax.random.normal(k2, (B, S, D), dtype=jnp.float32)

        # --- avg ---
        out_avg = jax.block_until_ready(
            Composer('avg', 'roberta-base')(r_left, r_right))
        ref_avg = 0.5 * (r_left + r_right)
        assert jnp.allclose(out_avg, ref_avg, atol=1e-6), "avg mismatch"

        # --- max ---
        vals, idx = Composer('max', 'roberta-base')(r_left, r_right)
        vals = jax.block_until_ready(vals)
        idx = jax.block_until_ready(idx)
        cat = jnp.concatenate([r_left, r_right], axis=1)
        ref_vals = jnp.max(cat, axis=1)
        ref_idx = jnp.argmax(cat, axis=1).astype(jnp.int32)
        assert jnp.allclose(vals, ref_vals, atol=1e-6), "max values mismatch"
        assert jnp.array_equal(idx, ref_idx), "max indices mismatch"

        # --- cat_first_last ---
        out_cat = jax.block_until_ready(
            Composer('cat_first_last', 'roberta-base')(r_left, r_right))
        ref_cat = jnp.concatenate(
            [r_left[:, :, :half_dim], r_right[:, :, half_dim:]], axis=-1)
        assert jnp.array_equal(out_cat, ref_cat), "cat_first_last mismatch"

    print("KERNEL_OK")
</pallas_src>

<mosaic_0001>
module attributes {stable_mosaic.version = 11 : i64} {
  func.func @_avg_kernel(%arg0: i32, %arg1: memref<8x768xf32, #tpu.memory_space<vmem>>, %arg2: memref<8x768xf32, #tpu.memory_space<vmem>>, %arg3: memref<8x768xf32, #tpu.memory_space<vmem>>) attributes {dimension_semantics = [#tpu.dimension_semantics<parallel>], iteration_bounds = array<i64: 2>, scalar_prefetch = 0 : i64, scratch_operands = 0 : i64, tpu.core_type = #tpu.core_type<tc>, window_params = [{transform_indices = @transform_0, window_bounds = array<i64: 8, 768>}, {transform_indices = @transform_1, window_bounds = array<i64: 8, 768>}, {transform_indices = @transform_2, window_bounds = array<i64: 8, 768>}]} {
    %c0 = arith.constant 0 : index
    %c0_0 = arith.constant 0 : index
    %0 = vector.load %arg1[%c0, %c0_0] : memref<8x768xf32, #tpu.memory_space<vmem>>, vector<8x768xf32>
    %c0_1 = arith.constant 0 : index
    %c0_2 = arith.constant 0 : index
    %1 = vector.load %arg2[%c0_1, %c0_2] : memref<8x768xf32, #tpu.memory_space<vmem>>, vector<8x768xf32>
    %2 = arith.addf %0, %1 : vector<8x768xf32>
    %cst = arith.constant 5.000000e-01 : f32
    %3 = vector.broadcast %cst : f32 to vector<8x768xf32>
    %4 = arith.mulf %2, %3 : vector<8x768xf32>
    %c0_3 = arith.constant 0 : index
    %c0_4 = arith.constant 0 : index
    %5 = vector.load %arg3[%c0_3, %c0_4] : memref<8x768xf32, #tpu.memory_space<vmem>>, vector<8x768xf32>
    tpu.vector_store %arg3[%c0_3, %c0_4], %4 {strides = array<i32>} : memref<8x768xf32, #tpu.memory_space<vmem>>, vector<8x768xf32>,
    return
  }
  func.func @transform_0(%arg0: i32) -> (i32, i32) {
    %c0_i32 = arith.constant 0 : i32
    %c0_i32_0 = arith.constant 0 : i32
    return %arg0, %c0_i32 : i32, i32
  }
  func.func @transform_1(%arg0: i32) -> (i32, i32) {
    %c0_i32 = arith.constant 0 : i32
    %c0_i32_0 = arith.constant 0 : i32
    return %arg0, %c0_i32 : i32, i32
  }
  func.func @transform_2(%arg0: i32) -> (i32, i32) {
    %c0_i32 = arith.constant 0 : i32
    %c0_i32_0 = arith.constant 0 : i32
    return %arg0, %c0_i32 : i32, i32
  }
}

</mosaic_0001>

<bundles_post_ra>
// kernel: tpu_custom_call.1
= control target key start
LH: loop header
LB: loop body
LE: loop exit
PB: predicated region body
PF: predicated region fallthrough
CT: control target
= control target key end

     0   :  { %7 = vsyncpa [#allocation3], 0  ;;  %s755_s0 = inlined_call_operand.hbm [shape: f32[16,768], index: 0, kind: input, shape index: {}]   ;;  %s756_s1 = inlined_call_operand.hbm [shape: f32[16,768], index: 1, kind: input, shape index: {}]   ;;  %s757_s2 = inlined_call_operand.hbm [shape: f32[16,768], index: 2, kind: output, shape index: {}]  }
   0x1   :  { %9 = vsyncpa [#allocation3 + $0x1], 0 }
   0x2   :  { %10 = vsyncpa [#allocation6], 0 }
   0x3   :  { %12 = vsyncpa [#allocation6 + $0x1], 0 }
   0x4   :  { %13 = vsyncpa [#allocation4], 0 }
   0x5   :  { %15 = vsyncpa [#allocation4 + $0x1], 0  ;;  %s552_s9 = smov 0   ;;  %s554_s10 = smov 0  }
   0x6   :  { %s556_s11 = smov 0   ;;  %s558_s12 = smov 0  }
   0x7 LB: > { %s573_s13 = sadd.s32 4294967295, %s532_s12   ;;  %s336_s14 = sadd.s32 4294967294, %s532_s12   ;;  %s532_s12 = sphi %s558_s12, %s775_s12   ;;  %s528_s11 = sphi %s556_s11, %s774_s11   ;;  %s524_s10 = sphi %s554_s10, %s773_s10   ;;  %s520_s9 = sphi %s552_s9, %s772_s9  }
   0x8   : > { %s577_s15 = sadd.s32 1, %s532_s12   ;;  %s28_s16 = sadd.s32 1, %s528_s11 }
   0x9   : > { %s25_s17 = ssub.s32 %s532_s12, %s577_s15  ;;  %p35_p0 = scmp.ne.s32.totalorder %s528_s11, %s524_s10 }
   0xa   : > { %p26_p1 = scmp.eq.s32.totalorder %s25_s17, 0  ;;  %p36_p2 = scmp.eq.s32.totalorder %s532_s12, 0 }
   0xb   : > { %p41_p3 = scmp.ne.s32.totalorder %s524_s10, %s520_s9  ;;  %p42_p4 = scmp.eq.s32.totalorder %s573_s13, 0 }
   0xc   : > { %s589_s18 = scalar_select %p26_p1, %s528_s11, %s28_s16  }
   0xd   : > { %p37_p5 = por %p36_p2, %p35_p0  ;;  %p591_p6 = por %p42_p4, %p41_p3 }
   0xe   : > { %p91_p7 = scmp.eq.s32.totalorder %s573_s13, 1  ;;  %p97_p8 = scmp.eq.s32.totalorder %s336_s14, 1 }
   0xf   : > { %s760_s19 = scalar_select %p591_p6, 1, 0 }
  0x10   : > { %p368_p10 = scmp.lt.s32.totalorder %s532_s12, 2  ;;  %p598_p11 = por %p91_p7, %p35_p0 }
  0x11   : > { %p602_p12 = por %p97_p8, %p41_p3  ;;  %s607_s22 = sand.u32 1, %s528_s11  }
  0x12   : > { %s761_s20 = scalar_select %p598_p11, 1, 0 }
  0x13   : > { %s762_s21 = scalar_select %p602_p12, 1, 0 }
  0x14   : > { %s346_s23 = smul.u32 768, %s532_s12  ;;  %p618_p13 = pnand %p368_p10, %p37_p5 }
  0x15   : > { %s345_s24 = smul.u32 48, %s607_s22  ;;  %s118_s3 = scalar_lea.sflag [#allocation3], %s607_s22 }
  0x16   : > { %s616_s27 = scalar_lea.hbm %s755_s0, %s346_s23  ;;  %p404_p3 = pneg %p618_p13 }
  0x17   : > { %s121_s29 = scalar_lea.vmem [#allocation2], %s345_s24  ;;  %s402_s4 = scalar_lea.hbm %s616_s27, 768 }
  0x18   : > { %s129_s30 = sshll.u32 %s121_s29, 4  ;;  %p403_p2 = scmp.ne.s32.totalorder %s616_s27, %s402_s4  ;;  %s625_s30 = int_to_ptr.vmem [resolvable:$true] %s129_s30 }
  0x19   : > { %s407_s7 = scalar_lea.hbm %s755_s0, 1536  ;;  %p408_p7 = scmp.lt.u32.totalorder %s616_s27, %s755_s0 }
  0x1a   : > { %p405_p4 = pnand %p404_p3, %p403_p2  ;;  %p409_p8 = scmp.lt.u32.totalorder %s407_s7, %s402_s4 }
  0x1b   : > { %p411_p9 = scmp.lt.u32.totalorder %s402_s4, %s616_s27 }
  0x1c   : > { %p406_p5 = pneg %p405_p4  ;;  %p410_p10 = por %p409_p8, %p408_p7 }
  0x1e   : > { %p412_p0 = por %p411_p9, %p410_p10 }
  0x20   : > { %p413_p1 = pnand %p412_p0, %p406_p5 }
  0x22   : > { %416 = shalt.err (!%p413_p1)
}
  0x23   : > { %s417_s16 = scalar_lea.vmem %s625_s30, 768  ;;  %s534_s17 = smov [#allocation2]  }
  0x24   : > { %p418_p2 = scmp.ne.s32.totalorder %s625_s30, %s417_s16  ;;  %s422_s25 = sshll.u32 %s534_s17, 4  ;;  %s423_s25 = int_to_ptr.vmem [resolvable:$false] %s422_s25 }
  0x25   : > { %s424_s26 = scalar_lea.vmem %s423_s25, 1536  ;;  %p425_p11 = scmp.lt.s32.totalorder %s625_s30, %s423_s25 }
  0x26   : > { %p420_p4 = pnand %p418_p2, %p404_p3  ;;  %p426_p7 = scmp.lt.s32.totalorder %s424_s26, %s417_s16 }
  0x28   : > { %p421_p12 = pneg %p420_p4  ;;  %p427_p8 = por %p426_p7, %p425_p11 }
  0x2a   : > { %p428_p9 = pnand %p427_p8, %p421_p12 }
  0x2c   : > { %431 = shalt.err (!%p428_p9)
}
  0x2d   : > { %360 = dma.hbm_to_vmem [thread:$0]  (!%p618_p13), %s616_s27, 768, %s625_s30, %s118_s3  }
  0x2e   : > { %p764_p0 = scmp.lt.s32.totalorder %s532_s12, 3  ;;  %p765_p1 = scmp.ge.s32.totalorder %s532_s12, 1 }
  0x2f   : > { %s667_s6 = scalar_lea.hbm %s756_s1, %s346_s23  ;;  %s140_s7 = scalar_lea.vmem [#allocation5], %s345_s24 }
  0x30   : > { %p658_p5 = pnand %p765_p1, %p764_p0  ;;  %s148_s8 = sshll.u32 %s140_s7, 4  ;;  %s149_s8 = int_to_ptr.vmem [resolvable:$true] %s148_s8 }
  0x31   : > { %s137_s27 = scalar_lea.sflag [#allocation6], %s607_s22  ;;  %s432_s30 = scalar_lea.hbm %s667_s6, 768 }
  0x32   : > { %s766_s29 = scalar_select %p658_p5, 1, 0 }
  0x33   : > { %p433_p11 = scmp.ne.s32.totalorder %s667_s6, %s432_s30  ;;  %s437_s23 = scalar_lea.hbm %s756_s1, 1536 }
  0x34   : > { %p438_p2 = scmp.lt.u32.totalorder %s667_s6, %s756_s1  ;;  %p439_p4 = scmp.lt.u32.totalorder %s437_s23, %s432_s30 }
  0x35   : > { %p435_p12 = pnand %p433_p11, %p404_p3  ;;  %p441_p8 = scmp.lt.u32.totalorder %s432_s30, %s667_s6 }
  0x36   : > { %p440_p7 = por %p439_p4, %p438_p2 }
  0x37   : > { %p436_p10 = pneg %p435_p12 }
  0x38   : > { %p442_p9 = por %p441_p8, %p440_p7 }
  0x3a   : > { %p443_p0 = pnand %p442_p9, %p436_p10 }
  0x3c   : > { %446 = shalt.err (!%p443_p0)
}
  0x3d   : > { %s447_s22 = scalar_lea.vmem %s149_s8, 768  ;;  %s535_s24 = smov [#allocation5]  }
  0x3e   : > { %p448_p1 = scmp.ne.s32.totalorder %s149_s8, %s447_s22  ;;  %s452_s25 = sshll.u32 %s535_s24, 4  ;;  %s453_s25 = int_to_ptr.vmem [resolvable:$false] %s452_s25 }
  0x3f   : > { %s454_s26 = scalar_lea.vmem %s453_s25, 1536  ;;  %p455_p6 = scmp.lt.s32.totalorder %s149_s8, %s453_s25 }
  0x40   : > { %p450_p11 = pnand %p448_p1, %p404_p3  ;;  %p456_p5 = scmp.lt.s32.totalorder %s454_s26, %s447_s22 }
  0x42   : > { %p451_p12 = pneg %p450_p11  ;;  %p457_p2 = por %p456_p5, %p455_p6 }
  0x44   : > { %p458_p4 = pnand %p457_p2, %p451_p12 }
  0x46   : > { %461 = shalt.err (!%p458_p4)
}
  0x47   : > { %363 = dma.hbm_to_vmem [thread:$0]  (!%p618_p13), %s667_s6, 768, %s149_s8, %s137_s27  }
  0x48   : > { %p767_p10 = scmp.ne.s32.totalorder %s766_s29, 0 }
  0x49   : > { %s694_s4 = sand.u32 (!%p767_p10), 1, %s524_s10   ;;  %p768_p3 = scmp.ne.s32.totalorder (!%p767_p10), %s760_s19, 0 }
  0x4a   : > { %157 = sbr.rel (%p767_p10) target bundleno = 110 (0x6e), region = 28  ;;  %s160_s7 = scalar_lea.sflag (!%p767_p10), [#allocation3], %s694_s4 }
  0x4b   : > { %s349_s5 = smul.u32 (!%p767_p10), 48, %s694_s4 }
  0x4d   : > { %s163_s30 = scalar_lea.vmem (!%p767_p10), [#allocation2], %s349_s5 }
  0x51   : > { %507 = dma.done.wait (%p768_p3), %s160_s7, 768  }
  0x52   : > { %509 = vsyncadd (%p768_p3), %s160_s7, 4294966528  ;;  %s169_s28 = scalar_lea.sflag [#allocation6], %s694_s4  ;;  %s172_s6 = scalar_lea.vmem [#allocation5], %s349_s5 }
  0x53   : > { %511 = dma.done.wait (%p768_p3), %s169_s28, 768  }
  0x54   : > { %513 = vsyncadd (%p768_p3), %s169_s28, 4294966528  ;;  %v198_v0 = vld [vmem:[%s163_s30] sm:$0xff]  ;;  %v199_v2 = vld [vmem:[%s163_s30 + $0x8] sm:$0xff]  ;;  %s350_s29 = smul.u32 768, %s573_s13  ;;  %s197_s8 = scalar_lea.vmem [#allocation7], %s349_s5 }
  0x55   : > { %v204_v1 = vld [vmem:[%s172_s6] sm:$0xff]  ;;  %v205_v4 = vld [vmem:[%s172_s6 + $0x8] sm:$0xff]  ;;  %v200_v5 = vld [vmem:[%s163_s30 + $0x10] sm:$0xff]  ;;  %s243_s27 = sshll.u32 %s197_s8, 4  ;;  %s229_s14 = scalar_lea.sflag [#allocation4], %s694_s4  ;;  %s708_s27 = int_to_ptr.vmem [resolvable:$true] %s243_s27 }
  0x56   : > { %v210_v3 = vadd.f32 %v204_v1, %v198_v0  ;;  %v206_v6 = vld [vmem:[%s172_s6 + $0x10] sm:$0xff]  ;;  %v211_v7 = vadd.f32 %v205_v4, %v199_v2  ;;  %v201_v9 = vld [vmem:[%s163_s30 + $0x18] sm:$0xff]  ;;  %v202_v11 = vld [vmem:[%s163_s30 + $0x20] sm:$0xff]  ;;  %s713_s3 = scalar_lea.hbm %s757_s2, %s350_s29  ;;  %s462_s23 = scalar_lea.vmem %s708_s27, 768 }
  0x57   : > { %v212_v8 = vadd.f32 %v206_v6, %v200_v5  ;;  %v207_v10 = vld [vmem:[%s172_s6 + $0x18] sm:$0xff]  ;;  %v208_v14 = vld [vmem:[%s172_s6 + $0x20] sm:$0xff]  ;;  %v203_v15 = vld [vmem:[%s163_s30 + $0x28] sm:$0xff]  ;;  %p463_p6 = scmp.ne.s32.totalorder %s708_s27, %s462_s23  ;;  %p769_p13 = scmp.ne.s32.totalorder %s761_s20, 0 }
  0x58   : > { %v216_v12 = vmul.f32 0.5, %v210_v3  ;;  %v213_v13 = vadd.f32 %v207_v10, %v201_v9  ;;  %v209_v16 = vld [vmem:[%s172_s6 + $0x28] sm:$0xff]  ;;  %v217_v17 = vmul.f32 0.5, %v211_v7  ;;  %v214_v19 = vadd.f32 %v208_v14, %v202_v11  ;;  %s536_s16 = smov [#allocation7]  }
  0x59   : > { %v218_v18 = vmul.f32 0.5, %v212_v8  ;;  %v215_v20 = vadd.f32 %v209_v16, %v203_v15  ;;  %p464_p5 = pnand %p463_p6, %p769_p13  ;;  %s466_s17 = sshll.u32 %s536_s16, 4  ;;  %s467_s17 = int_to_ptr.vmem [resolvable:$false] %s466_s17 }
  0x5a   : > { %222 = vst [vmem:[%s197_s8] sm:$0xff] %v216_v12  ;;  %v219_v21 = vmul.f32 0.5, %v213_v13  ;;  %223 = vst [vmem:[%s197_s8 + $0x8] sm:$0xff] %v217_v17  ;;  %v220_v22 = vmul.f32 0.5, %v214_v19  ;;  %s468_s22 = scalar_lea.vmem %s467_s17, 1536  ;;  %p469_p8 = scmp.lt.s32.totalorder %s708_s27, %s467_s17 }
  0x5b   : > { %224 = vst [vmem:[%s197_s8 + $0x10] sm:$0xff] %v218_v18  ;;  %v221_v23 = vmul.f32 0.5, %v215_v20  ;;  %p465_p7 = pneg %p464_p5  ;;  %p470_p9 = scmp.lt.s32.totalorder %s468_s22, %s462_s23 }
  0x5c   : > { %225 = vst [vmem:[%s197_s8 + $0x18] sm:$0xff] %v219_v21  ;;  %226 = vst [vmem:[%s197_s8 + $0x20] sm:$0xff] %v220_v22 }
  0x5d   : > { %227 = vst [vmem:[%s197_s8 + $0x28] sm:$0xff] %v221_v23  ;;  %p471_p0 = por %p470_p9, %p469_p8 }
  0x5f   : > { %p472_p1 = pnand %p471_p0, %p465_p7 }
  0x61   : > { %475 = shalt.err (!%p472_p1)
}
  0x62   : > { %s476_s24 = scalar_lea.hbm %s713_s3, 768  ;;  %s480_s4 = scalar_lea.hbm %s757_s2, 1536 }
  0x63   : > { %p477_p11 = scmp.ne.s32.totalorder %s713_s3, %s476_s24  ;;  %p481_p4 = scmp.lt.u32.totalorder %s713_s3, %s757_s2 }
  0x64   : > { %p482_p10 = scmp.lt.u32.totalorder %s480_s4, %s476_s24  ;;  %p484_p6 = scmp.lt.u32.totalorder %s476_s24, %s713_s3 }
  0x65   : > { %p478_p12 = pnand %p477_p11, %p769_p13 }
  0x66   : > { %p483_p3 = por %p482_p10, %p481_p4 }
  0x67   : > { %p479_p2 = pneg %p478_p12 }
  0x68   : > { %p485_p5 = por %p484_p6, %p483_p3 }
  0x6a   : > { %p486_p7 = pnand %p485_p5, %p479_p2 }
  0x6c   : > { %489 = shalt.err (!%p486_p7)
}
  0x6d   : > { %355 = dma.vmem_to_hbm [thread:$0]  (%p769_p13), %s708_s27, 768, %s713_s3, %s229_s14  }
  0x6e PF: > { %s255_s30 = sand.u32 1, %s520_s9   ;;  %p770_p8 = scmp.ne.s32.totalorder %s762_s21, 0 }
  0x6f   : > { %p771_p9 = scmp.ge.s32.totalorder %s532_s12, 2  ;;  %s256_s28 = scalar_lea.sflag [#allocation4], %s255_s30 }
  0x71   : > { %p365_p0 = pnand %p771_p9, %p770_p8 }
  0x73   : > { %515 = dma.done.wait (!%p365_p0), %s256_s28, 768  }
  0x74   : > { %517 = vsyncadd (!%p365_p0), %s256_s28, 4294966528  ;;  %p18_p1 = scmp.ge.s32.totalorder %s577_s15, 4   ;;  %s772_s9 = smov %s524_s10 }
  0x75   : > { %s773_s10 = smov %s528_s11  ;;  %s774_s11 = smov %s589_s18 }
  0x76   : > { %s775_s12 = smov %s577_s15  ;;  %20 = sbr.rel (!%p18_p1) target bundleno = 7 (0x7), region = 86 }
  0x7d   :  { %261 = vsyncpa [#allocation3], 1 }
  0x7e   :  { %263 = vsyncpa [#allocation3 + $0x1], 1 }
  0x7f   :  { %264 = vsyncpa [#allocation6], 1 }
  0x80   :  { %266 = vsyncpa [#allocation6 + $0x1], 1 }
  0x81   :  { %267 = vsyncpa [#allocation4], 1 }
  0x82   :  { %269 = vsyncpa [#allocation4 + $0x1], 1 }

</bundles_post_ra>
